<compile_context>
chip_gen: v7x
topology: tpu7x:2x2x1
jax: 0.10.0
libtpu: 0.0.40
codegen_flags: <defaults>
</compile_context>

<pallas_src>
import math

import jax
import jax.numpy as jnp
import numpy as np
from jax.experimental import pallas as pl
from jax.experimental.pallas import tpu as pltpu

NUM_TAGS = 64
EMBED_DIM = 32                              # D
NUM_HEADS = 8                               # H
HEAD_DIM = EMBED_DIM // NUM_HEADS           # Dh = 4
E_DIM = NUM_HEADS * NUM_HEADS * HEAD_DIM    # 256: expanded (query-head, key-head, dim) axis
HH = NUM_HEADS * NUM_HEADS                  # 64:  (query-head, key-head) score axis
LN_EPS = 1e-5
PACK = 4                                    # rows packed per lane-dense output row (4*32=128)
VMEM_LIMIT = 48 * 1024 * 1024               # explicit scoped-VMEM limit (headroom on v7x's 64 MiB)


def _round_up(x, m):
    return ((x + m - 1) // m) * m


def _layernorm(x, g, b):
    mu = jnp.mean(x, axis=-1, keepdims=True)
    var = jnp.mean(jnp.square(x - mu), axis=-1, keepdims=True)
    return (x - mu) * jax.lax.rsqrt(var + LN_EPS) * g + b


def _gelu_exact(x):
    # nn.GELU() default = exact erf form
    return 0.5 * x * (1.0 + jax.lax.erf(x * (1.0 / math.sqrt(2.0))))


def _build_selectors():
    """Constant 0/1 selector matrices for the batched all-heads head-axis attention."""
    H, Dh, D = NUM_HEADS, HEAD_DIM, EMBED_DIM
    e = np.arange(E_DIM)                 # e = (h*H + g)*Dh + d
    h_e = e // (H * Dh)
    g_e = (e // Dh) % H
    d_e = e % Dh
    j = np.arange(D)
    hg = np.arange(HH)                   # hg = h*H + g
    eq = (j[:, None] == (h_e * Dh + d_e)[None, :]).astype(np.float32)      # [D, 256]
    ek = (j[:, None] == (g_e * Dh + d_e)[None, :]).astype(np.float32)      # [D, 256]
    rsel = ((e[:, None] // Dh) == hg[None, :]).astype(np.float32)          # [256, 64]
    gsum = ((hg[:, None] // H) == (hg[None, :] // H)).astype(np.float32)   # [64, 64]
    pexp = (hg[:, None] == (e[None, :] // Dh)).astype(np.float32)          # [64, 256]
    osel = ((h_e * Dh + d_e)[:, None] == j[None, :]).astype(np.float32)    # [256, D]
    return eq, ek, rsel, gsum, pexp, osel


_EQ, _EK, _RSEL, _GSUM, _PEXP, _OSEL = _build_selectors()


# ---------------------------------------------------------------------------
# Kernel 1: per-token pipeline, row-blocked over B*L, lane-dense packed output
# ---------------------------------------------------------------------------
def _rows_kernel(xin_ref, ln_ref, wqkv_ref, rsel_ref, gsum_ref, pexp_ref, ow_ref,
                 eye_ref, out_ref):
    D, E = EMBED_DIM, E_DIM
    ln = ln_ref[...]                       # [1, 4D] packed norm1/norm2 gamma+beta
    xin = xin_ref[...]                     # [Rt, 2D]: [:, :D]=emb*importance, [:, D]=kp flag
    kp = xin[:, D:D + 1]                   # [Rt, 1] key-padding keep flag

    x = _layernorm(xin[:, 0:D], ln[:, 0:D], ln[:, D:2 * D])                  # [Rt, D]

    # fused head-expanded Q|K|V projection: one bf16 K=32 matmul, lane-aligned slices
    qkv = jnp.dot(x.astype(jnp.bfloat16), wqkv_ref[...],
                  preferred_element_type=jnp.float32)                        # [Rt, 768]
    qe = qkv[:, 0:E]
    ke = qkv[:, E:2 * E] * kp              # masked keys
    ve = qkv[:, 2 * E:3 * E] * kp          # masked values

    # all H*H (query-head, key-head) scores per token; 1/sqrt(Dh) folded into rsel
    s = jnp.dot((qe * ke).astype(jnp.bfloat16), rsel_ref[...],
                preferred_element_type=jnp.float32)                          # [Rt, 64]
    # global row max; the same constant is subtracted from every head group, so the
    # per-group softmax is mathematically unchanged (shift invariance).
    s_max = jnp.max(s, axis=-1, keepdims=True)
    e = jnp.exp(s - s_max)
    z = jnp.dot(e.astype(jnp.bfloat16), gsum_ref[...],
                preferred_element_type=jnp.float32)                          # per-group sums
    p = e * pl.reciprocal(z, approx=True)  # softmax over the key-head axis per query head

    pv = jnp.dot(p.astype(jnp.bfloat16), pexp_ref[...],
                 preferred_element_type=jnp.float32) * ve                     # [Rt, 256]
    attn = jnp.dot(pv.astype(jnp.bfloat16), ow_ref[...],
                   preferred_element_type=jnp.float32)                        # head gather ∘ Wo
    y = _layernorm(attn, ln[:, 2 * D:3 * D], ln[:, 3 * D:4 * D])              # [Rt, D]

    # Lane-dense store: pack PACK contiguous row-chunks into the 128-lane axis using exact
    # identity-selector dots (f32, 0/1 weights), then one unmasked full-width store.
    r4 = y.shape[0] // PACK
    eye = eye_ref[...]                     # [4D, 4D] identity
    packed = jnp.dot(y[0:r4], eye[0:D, :], preferred_element_type=jnp.float32)
    for c in range(1, PACK):
        packed += jnp.dot(y[c * r4:(c + 1) * r4], eye[c * D:(c + 1) * D, :],
                          preferred_element_type=jnp.float32)
    out_ref[...] = packed                  # [Rt/4, 4D]


# ---------------------------------------------------------------------------
# Kernel 2: masked mean pooling (per-batch blocks, lane-dense) + context projection
# ---------------------------------------------------------------------------
def _ctx_kernel(pwx_ref, att_ref, psel_ref, w1_ref, w2_ref, vec_ref, ctx_ref):
    D, D2 = EMBED_DIM, 2 * EMBED_DIM
    vec = vec_ref[...]                     # [1, 3*D2 + 3*D] packed biases / LN params

    # pooled[b, d] = sum_l pw[b, l] * att[b, l, d], via one [L*D, D] selector matmul
    wsum = (pwx_ref[...] * att_ref[...]).astype(jnp.bfloat16)                 # [Bt, L*D]
    pooled = jnp.dot(wsum, psel_ref[...], preferred_element_type=jnp.float32)  # [Bt, D]

    h1 = jnp.dot(pooled.astype(jnp.bfloat16), w1_ref[...],
                 preferred_element_type=jnp.float32) + vec[:, 0:D2]
    h1 = _gelu_exact(_layernorm(h1, vec[:, D2:2 * D2], vec[:, 2 * D2:3 * D2]))
    # Dropout is identity in eval mode.
    h2 = jnp.dot(h1.astype(jnp.bfloat16), w2_ref[...],
                 preferred_element_type=jnp.float32) + vec[:, 3 * D2:3 * D2 + D]
    # context_scale clamp is folded into the final LN gamma/beta in the wrapper.
    ctx_ref[...] = _layernorm(h2, vec[:, 3 * D2 + D:3 * D2 + 2 * D],
                              vec[:, 3 * D2 + 2 * D:3 * D2 + 3 * D])


# ---------------------------------------------------------------------------
# Tile heuristics (>=2 grid steps when possible so v7x megacore can shard)
# ---------------------------------------------------------------------------
def _pick_row_tile(n):
    # multiple of 32 (4-row lane packing needs Rt/4 % 8 == 0), capped at 1024
    t = _round_up(max(n, 1), 32)
    if n >= 64:
        t = min(t, _round_up(pl.cdiv(n, 2), 32))
    return min(t, 1024)


def _pick_batch_tile(b, ld):
    # keep each (Bt, L*D) f32 input block around <=4 MiB, tile multiple of 8
    cap = max(8, min(512, ((4 * 1024 * 1024) // max(ld * 4, 1)) // 8 * 8))
    t = _round_up(max(b, 1), 8)
    if b >= 16:
        t = min(t, _round_up(pl.cdiv(b, 2), 8))
    return min(t, cap)


def optimized_tag_embedding_forward(params, tag_indices_dict, tag_masks_dict=None):
    """Returns (tag_context [B, D], attended [B, L, D])."""
    D, D2, E = EMBED_DIM, 2 * EMBED_DIM, E_DIM
    cats = list(tag_indices_dict.keys())
    idx = jnp.concatenate([tag_indices_dict[c] for c in cats], axis=1)          # [B, L]
    B, L = idx.shape
    if tag_masks_dict is not None:
        m = jnp.concatenate([tag_masks_dict[c] for c in cats], axis=1).astype(jnp.float32)
    else:
        m = jnp.ones((B, L), jnp.float32)   # all-ones mask reproduces the maskless path exactly
    N = B * L
    LD = L * D

    f32 = lambda a: jnp.asarray(a, jnp.float32)
    bf16 = lambda a: jnp.asarray(a, jnp.bfloat16)

    # --- wrapper glue: gathers + parameter packing (pure functions of params / indices) ---
    imp_table = jnp.clip(jax.nn.sigmoid(f32(params["tag_importance"]))
                         * f32(params["importance_scale"]), 0.01, 10.0)        # [num_tags]
    emb_w = f32(params["embedding"])[idx] * imp_table[idx][..., None]          # importance folded
    kp = ((m * jnp.sum(m, axis=1, keepdims=True)) > 0.0).astype(jnp.float32)   # [B, L]
    # embedding block carries the key-padding flag as an extra lane-padded column
    xin = jnp.concatenate([emb_w.reshape(N, D), kp.reshape(N, 1),
                           jnp.zeros((N, D - 1), jnp.float32)], axis=1)        # [N, 2D]

    ln_pack = jnp.concatenate([f32(params["norm1_g"]), f32(params["norm1_b"]),
                               f32(params["norm2_g"]), f32(params["norm2_b"])]).reshape(1, 4 * D)

    wq_t, wk_t = f32(params["q_w"]).T, f32(params["k_w"]).T
    wv_t, wo_t = f32(params["v_w"]).T, f32(params["out_w"]).T
    eqj, ekj = jnp.asarray(_EQ), jnp.asarray(_EK)
    wqkv = bf16(jnp.concatenate([wq_t @ eqj, wk_t @ ekj, wv_t @ ekj], axis=1))  # [D, 3*256]
    ow = bf16(jnp.asarray(_OSEL) @ wo_t)                                        # [256, D]
    rsel = bf16(jnp.asarray(_RSEL) * (HEAD_DIM ** -0.5))   # 0.5 exact in bf16; scale folded
    gsum = bf16(jnp.asarray(_GSUM))
    pexp = bf16(jnp.asarray(_PEXP))
    pack_eye = jnp.eye(PACK * D, dtype=jnp.float32)                             # [128, 128]

    # --- kernel 1: all per-token work, row-blocked over B*L ---
    Rt = _pick_row_tile(N)
    N_pad = _round_up(N, Rt)
    if N_pad != N:
        xin = jnp.pad(xin, ((0, N_pad - N), (0, 0)))
    nblk = N_pad // Rt
    r4 = Rt // PACK

    row = lambda i: (i, 0)
    cst = lambda i: (0, 0)
    packed = pl.pallas_call(
        _rows_kernel,
        grid=(nblk,),
        in_specs=[
            pl.BlockSpec((Rt, 2 * D), row),      # emb*importance | kp flag
            pl.BlockSpec((1, 4 * D), cst),       # norm1/norm2 gamma+beta (lane-dense pack)
            pl.BlockSpec((D, 3 * E), cst),       # fused head-expanded Wq|Wk|Wv (bf16)
            pl.BlockSpec((E, HH), cst),          # score-reduce selector (scale folded, bf16)
            pl.BlockSpec((HH, HH), cst),         # per-head group-sum selector (bf16)
            pl.BlockSpec((HH, E), cst),          # prob-expand selector (bf16)
            pl.BlockSpec((E, D), cst),           # head-gather ∘ Wo (bf16)
            pl.BlockSpec((PACK * D, PACK * D), cst),  # identity for lane packing
        ],
        out_specs=pl.BlockSpec((r4, PACK * D), row),
        out_shape=jax.ShapeDtypeStruct((N_pad // PACK, PACK * D), jnp.float32),
        compiler_params=pltpu.CompilerParams(
            dimension_semantics=("parallel",),
            vmem_limit_bytes=VMEM_LIMIT),
    )(xin, ln_pack, wqkv, rsel, gsum, pexp, ow, pack_eye)

    # unpack the lane-dense (4 rows per output row, per grid block) layout back to [N, D]
    attended_rows = (packed.reshape(nblk, r4, PACK, D)
                           .transpose(0, 2, 1, 3)
                           .reshape(N_pad, D))[:N]
    attended = attended_rows.reshape(B, L, D)

    # --- kernel 2: masked mean pooling (per-batch blocks) + context_proj ---
    denom = jnp.maximum(jnp.sum(m, axis=1, keepdims=True), 1.0)
    pwx = jnp.repeat(m / denom, D, axis=1)                                      # [B, L*D]
    att_flat = attended_rows.reshape(B, LD)                                     # lane-dense slab

    Bt = _pick_batch_tile(B, LD)
    B_pad = _round_up(B, Bt)
    if B_pad != B:
        pwx = jnp.pad(pwx, ((0, B_pad - B), (0, 0)))
        att_flat = jnp.pad(att_flat, ((0, B_pad - B), (0, 0)))

    psel = bf16(jnp.tile(jnp.eye(D, dtype=jnp.float32), (L, 1)))                # [L*D, D]
    ctx_scale = jnp.clip(f32(params["context_scale"]), 0.1, 10.0)
    vec_pack = jnp.concatenate([
        f32(params["ctx_b1"]), f32(params["ctx_ln1_g"]), f32(params["ctx_ln1_b"]),
        f32(params["ctx_b2"]),
        f32(params["ctx_ln2_g"]) * ctx_scale, f32(params["ctx_ln2_b"]) * ctx_scale,
    ]).reshape(1, 3 * D2 + 3 * D)
    w1 = bf16(f32(params["ctx_w1"]).T)          # [D, 2D]
    w2 = bf16(f32(params["ctx_w2"]).T)          # [2D, D]

    ctx_pad = pl.pallas_call(
        _ctx_kernel,
        grid=(B_pad // Bt,),
        in_specs=[
            pl.BlockSpec((Bt, LD), row),             # expanded pooling weights
            pl.BlockSpec((Bt, LD), row),             # attended rows, lane-dense per batch
            pl.BlockSpec((LD, D), cst),              # pooling sum selector (bf16)
            pl.BlockSpec((D, D2), cst),              # ctx fc1 W^T (bf16)
            pl.BlockSpec((D2, D), cst),              # ctx fc2 W^T (bf16)
            pl.BlockSpec((1, 3 * D2 + 3 * D), cst),  # packed biases / LN params (scale folded)
        ],
        out_specs=pl.BlockSpec((Bt, D), row),
        out_shape=jax.ShapeDtypeStruct((B_pad, D), jnp.float32),
        compiler_params=pltpu.CompilerParams(
            dimension_semantics=("parallel",),
            vmem_limit_bytes=VMEM_LIMIT),
    )(pwx, att_flat, psel, w1, w2, vec_pack)

    return ctx_pad[:B], attended


def reference_forward(params, tag_indices_dict, tag_masks_dict):
    """Plain-JAX replica of the PyTorch forward (eval mode) for validation."""
    cats = list(tag_indices_dict.keys())
    idx = jnp.concatenate([tag_indices_dict[c] for c in cats], axis=1)
    m = jnp.concatenate([tag_masks_dict[c] for c in cats], axis=1).astype(jnp.float32)
    B, L = idx.shape
    D, H = EMBED_DIM, NUM_HEADS
    Dh = D // H
    emb = params["embedding"][idx]
    imp = jnp.clip(jax.nn.sigmoid(params["tag_importance"]) * params["importance_scale"],
                   0.01, 10.0)
    x = emb * imp[idx][..., None]
    x = _layernorm(x, params["norm1_g"], params["norm1_b"])
    q = x @ params["q_w"].T
    k = x @ params["k_w"].T
    v = x @ params["v_w"].T
    kp = ((m * jnp.sum(m, axis=1, keepdims=True)) > 0).astype(jnp.float32)[..., None]
    k = k * kp
    v = v * kp
    qh = q.reshape(B, L, H, Dh)
    kh = k.reshape(B, L, H, Dh)
    vh = v.reshape(B, L, H, Dh)
    s = jnp.einsum("blhd,blgd->blhg", qh, kh) * (Dh ** -0.5)
    p = jax.nn.softmax(s, axis=-1)
    o = jnp.einsum("blhg,blgd->blhd", p, vh).reshape(B, L, D)
    o = o @ params["out_w"].T
    attended = _layernorm(o, params["norm2_g"], params["norm2_b"])
    pooled = (attended * m[..., None]).sum(axis=1) / jnp.maximum(
        jnp.sum(m, axis=1, keepdims=True), 1.0)
    h1 = pooled @ params["ctx_w1"].T + params["ctx_b1"]
    h1 = _layernorm(h1, params["ctx_ln1_g"], params["ctx_ln1_b"])
    h1 = _gelu_exact(h1)
    h2 = h1 @ params["ctx_w2"].T + params["ctx_b2"]
    h2 = _layernorm(h2, params["ctx_ln2_g"], params["ctx_ln2_b"])
    ctx = h2 * jnp.clip(params["context_scale"], 0.1, 10.0)
    return ctx, attended


def init_params(key, num_tags=NUM_TAGS, dim=EMBED_DIM):
    ks = jax.random.split(key, 9)
    xavier_bound = 0.1 * math.sqrt(6.0 / (dim + dim))
    lin1_bound = 1.0 / math.sqrt(dim)
    lin2_bound = 1.0 / math.sqrt(2 * dim)
    u = lambda k, shape, b: jax.random.uniform(k, shape, jnp.float32, -b, b)
    return {
        "embedding": jax.random.normal(ks[0], (num_tags, dim), jnp.float32),
        "tag_importance": jnp.full((num_tags,), 0.1, jnp.float32),
        "q_w": u(ks[1], (dim, dim), xavier_bound),
        "k_w": u(ks[2], (dim, dim), xavier_bound),
        "v_w": u(ks[3], (dim, dim), xavier_bound),
        "out_w": u(ks[4], (dim, dim), xavier_bound),
        "norm1_g": jnp.ones((dim,), jnp.float32),
        "norm1_b": jnp.zeros((dim,), jnp.float32),
        "norm2_g": jnp.ones((dim,), jnp.float32),
        "norm2_b": jnp.zeros((dim,), jnp.float32),
        "ctx_w1": u(ks[5], (2 * dim, dim), lin1_bound),
        "ctx_b1": u(ks[6], (2 * dim,), lin1_bound),
        "ctx_ln1_g": jnp.ones((2 * dim,), jnp.float32),
        "ctx_ln1_b": jnp.zeros((2 * dim,), jnp.float32),
        "ctx_w2": u(ks[7], (dim, 2 * dim), lin2_bound),
        "ctx_b2": u(ks[8], (dim,), lin2_bound),
        "ctx_ln2_g": jnp.ones((dim,), jnp.float32),
        "ctx_ln2_b": jnp.zeros((dim,), jnp.float32),
        "importance_scale": jnp.float32(0.1),
        "context_scale": jnp.float32(1.0),
    }


if __name__ == "__main__":
    key = jax.random.PRNGKey(0)
    pkey, ikey1, ikey2 = jax.random.split(key, 3)
    params = init_params(pkey)

    B = 2
    tag_indices = {
        "artist": jax.random.randint(ikey1, (B, 4), 0, NUM_TAGS),
        "character": jax.random.randint(ikey2, (B, 4), 0, NUM_TAGS),
    }
    tag_masks = {
        "artist": jnp.array([[1, 1, 1, 0], [1, 1, 0, 0]], jnp.float32),
        "character": jnp.array([[1, 1, 0, 0], [1, 0, 0, 0]], jnp.float32),
    }

    ctx, attended = optimized_tag_embedding_forward(params, tag_indices, tag_masks)
    jax.block_until_ready((ctx, attended))

    ref_ctx, ref_att = reference_forward(params, tag_indices, tag_masks)
    assert ctx.shape == (B, EMBED_DIM) and attended.shape == (B, 8, EMBED_DIM)
    assert bool(jnp.all(jnp.isfinite(ctx))) and bool(jnp.all(jnp.isfinite(attended)))
    assert bool(jnp.allclose(ctx, ref_ctx, rtol=5e-2, atol=5e-2))
    assert bool(jnp.allclose(attended, ref_att, rtol=5e-2, atol=5e-2))
    print("KERNEL_OK")
</pallas_src>

<mosaic_0001>
module attributes {stable_mosaic.version = 11 : i64} {
  func.func @_rows_kernel(%arg0: i32, %arg1: memref<32x64xf32, #tpu.memory_space<vmem>>, %arg2: memref<1x128xf32, #tpu.memory_space<vmem>>, %arg3: memref<32x768xbf16, #tpu.memory_space<vmem>>, %arg4: memref<256x64xbf16, #tpu.memory_space<vmem>>, %arg5: memref<64x64xbf16, #tpu.memory_space<vmem>>, %arg6: memref<64x256xbf16, #tpu.memory_space<vmem>>, %arg7: memref<256x32xbf16, #tpu.memory_space<vmem>>, %arg8: memref<128x128xf32, #tpu.memory_space<vmem>>, %arg9: memref<8x128xf32, #tpu.memory_space<vmem>>) attributes {dimension_semantics = [#tpu.dimension_semantics<parallel>], iteration_bounds = array<i64: 1>, scalar_prefetch = 0 : i64, scratch_operands = 0 : i64, tpu.core_type = #tpu.core_type<tc>, window_params = [{transform_indices = @transform_0, window_bounds = array<i64: 32, 64>}, {pipeline_mode = #tpu.pipeline_mode<synchronous>, transform_indices = @transform_1, window_bounds = array<i64: 1, 128>}, {pipeline_mode = #tpu.pipeline_mode<synchronous>, transform_indices = @transform_2, window_bounds = array<i64: 32, 768>}, {pipeline_mode = #tpu.pipeline_mode<synchronous>, transform_indices = @transform_3, window_bounds = array<i64: 256, 64>}, {pipeline_mode = #tpu.pipeline_mode<synchronous>, transform_indices = @transform_4, window_bounds = array<i64: 64, 64>}, {pipeline_mode = #tpu.pipeline_mode<synchronous>, transform_indices = @transform_5, window_bounds = array<i64: 64, 256>}, {pipeline_mode = #tpu.pipeline_mode<synchronous>, transform_indices = @transform_6, window_bounds = array<i64: 256, 32>}, {pipeline_mode = #tpu.pipeline_mode<synchronous>, transform_indices = @transform_7, window_bounds = array<i64: 128, 128>}, {transform_indices = @transform_8, window_bounds = array<i64: 8, 128>}]} {
    %c0 = arith.constant 0 : index
    %c0_0 = arith.constant 0 : index
    %0 = vector.load %arg2[%c0, %c0_0] : memref<1x128xf32, #tpu.memory_space<vmem>>, vector<1x128xf32>
    %c0_1 = arith.constant 0 : index
    %c0_2 = arith.constant 0 : index
    %1 = vector.load %arg1[%c0_1, %c0_2] : memref<32x64xf32, #tpu.memory_space<vmem>>, vector<32x64xf32>
    %2 = vector.extract_strided_slice %1 {offsets = [0, 32], sizes = [32, 1], strides = [1, 1]} : vector<32x64xf32> to vector<32x1xf32>
    %3 = vector.extract_strided_slice %1 {offsets = [0, 0], sizes = [32, 32], strides = [1, 1]} : vector<32x64xf32> to vector<32x32xf32>
    %4 = vector.extract_strided_slice %0 {offsets = [0, 0], sizes = [1, 32], strides = [1, 1]} : vector<1x128xf32> to vector<1x32xf32>
    %5 = vector.extract_strided_slice %0 {offsets = [0, 32], sizes = [1, 32], strides = [1, 1]} : vector<1x128xf32> to vector<1x32xf32>
    %cst = arith.constant dense<0.000000e+00> : vector<32xf32>
    %6 = vector.multi_reduction <add>, %3, %cst [1] : vector<32x32xf32> to vector<32xf32>
    %7 = vector.shape_cast %6 : vector<32xf32> to vector<32x1xf32>
    %cst_3 = arith.constant 3.200000e+01 : f32
    %8 = vector.broadcast %cst_3 : f32 to vector<32x1xf32>
    %9 = arith.divf %7, %8 : vector<32x1xf32>
    %10 = vector.broadcast %9 : vector<32x1xf32> to vector<32x32xf32>
    %11 = arith.subf %3, %10 : vector<32x32xf32>
    %12 = arith.mulf %11, %11 : vector<32x32xf32>
    %cst_4 = arith.constant dense<0.000000e+00> : vector<32xf32>
    %13 = vector.multi_reduction <add>, %12, %cst_4 [1] : vector<32x32xf32> to vector<32xf32>
    %14 = vector.shape_cast %13 : vector<32xf32> to vector<32x1xf32>
    %cst_5 = arith.constant 3.200000e+01 : f32
    %15 = vector.broadcast %cst_5 : f32 to vector<32x1xf32>
    %16 = arith.divf %14, %15 : vector<32x1xf32>
    %17 = vector.broadcast %9 : vector<32x1xf32> to vector<32x32xf32>
    %18 = arith.subf %3, %17 : vector<32x32xf32>
    %cst_6 = arith.constant 9.99999974E-6 : f32
    %19 = vector.broadcast %cst_6 : f32 to vector<32x1xf32>
    %20 = arith.addf %16, %19 : vector<32x1xf32>
    %21 = math.rsqrt %20 : vector<32x1xf32>
    %22 = vector.broadcast %21 : vector<32x1xf32> to vector<32x32xf32>
    %23 = arith.mulf %18, %22 : vector<32x32xf32>
    %24 = vector.broadcast %4 : vector<1x32xf32> to vector<32x32xf32>
    %25 = arith.mulf %23, %24 : vector<32x32xf32>
    %26 = vector.broadcast %5 : vector<1x32xf32> to vector<32x32xf32>
    %27 = arith.addf %25, %26 : vector<32x32xf32>
    %28 = arith.truncf %27 : vector<32x32xf32> to vector<32x32xbf16>
    %c0_7 = arith.constant 0 : index
    %c0_8 = arith.constant 0 : index
    %29 = vector.load %arg3[%c0_7, %c0_8] : memref<32x768xbf16, #tpu.memory_space<vmem>>, vector<32x768xbf16>
    %cst_9 = arith.constant dense<0.000000e+00> : vector<32x768xf32>
    %30 = tpu.matmul %28, %29, %cst_9 {dimension_numbers = #tpu.dot_dimension_numbers<[1], [0], [0], [1], [0, 0, 1, 1], [], []>} : vector<32x32xbf16>, vector<32x768xbf16>, vector<32x768xf32> -> vector<32x768xf32>
    %31 = vector.extract_strided_slice %30 {offsets = [0, 0], sizes = [32, 256], strides = [1, 1]} : vector<32x768xf32> to vector<32x256xf32>
    %32 = vector.extract_strided_slice %30 {offsets = [0, 256], sizes = [32, 256], strides = [1, 1]} : vector<32x768xf32> to vector<32x256xf32>
    %33 = vector.broadcast %2 : vector<32x1xf32> to vector<32x256xf32>
    %34 = arith.mulf %32, %33 : vector<32x256xf32>
    %35 = vector.extract_strided_slice %30 {offsets = [0, 512], sizes = [32, 256], strides = [1, 1]} : vector<32x768xf32> to vector<32x256xf32>
    %36 = vector.broadcast %2 : vector<32x1xf32> to vector<32x256xf32>
    %37 = arith.mulf %35, %36 : vector<32x256xf32>
    %38 = arith.mulf %31, %34 : vector<32x256xf32>
    %39 = arith.truncf %38 : vector<32x256xf32> to vector<32x256xbf16>
    %c0_10 = arith.constant 0 : index
    %c0_11 = arith.constant 0 : index
    %40 = vector.load %arg4[%c0_10, %c0_11] : memref<256x64xbf16, #tpu.memory_space<vmem>>, vector<256x64xbf16>
    %cst_12 = arith.constant dense<0.000000e+00> : vector<32x64xf32>
    %41 = tpu.matmul %39, %40, %cst_12 {dimension_numbers = #tpu.dot_dimension_numbers<[1], [0], [0], [1], [0, 0, 1, 1], [], []>} : vector<32x256xbf16>, vector<256x64xbf16>, vector<32x64xf32> -> vector<32x64xf32>
    %cst_13 = arith.constant dense<0xFF800000> : vector<32xf32>
    %42 = vector.multi_reduction <maximumf>, %41, %cst_13 [1] : vector<32x64xf32> to vector<32xf32>
    %43 = vector.shape_cast %42 : vector<32xf32> to vector<32x1xf32>
    %44 = vector.broadcast %43 : vector<32x1xf32> to vector<32x64xf32>
    %45 = arith.subf %41, %44 : vector<32x64xf32>
    %46 = math.exp %45 : vector<32x64xf32>
    %47 = arith.truncf %46 : vector<32x64xf32> to vector<32x64xbf16>
    %c0_14 = arith.constant 0 : index
    %c0_15 = arith.constant 0 : index
    %48 = vector.load %arg5[%c0_14, %c0_15] : memref<64x64xbf16, #tpu.memory_space<vmem>>, vector<64x64xbf16>
    %cst_16 = arith.constant dense<0.000000e+00> : vector<32x64xf32>
    %49 = tpu.matmul %47, %48, %cst_16 {dimension_numbers = #tpu.dot_dimension_numbers<[1], [0], [0], [1], [0, 0, 1, 1], [], []>} : vector<32x64xbf16>, vector<64x64xbf16>, vector<32x64xf32> -> vector<32x64xf32>
    %50 = tpu.reciprocal %49 {approx = true} : vector<32x64xf32> -> vector<32x64xf32>
    %51 = arith.mulf %46, %50 : vector<32x64xf32>
    %52 = arith.truncf %51 : vector<32x64xf32> to vector<32x64xbf16>
    %c0_17 = arith.constant 0 : index
    %c0_18 = arith.constant 0 : index
    %53 = vector.load %arg6[%c0_17, %c0_18] : memref<64x256xbf16, #tpu.memory_space<vmem>>, vector<64x256xbf16>
    %cst_19 = arith.constant dense<0.000000e+00> : vector<32x256xf32>
    %54 = tpu.matmul %52, %53, %cst_19 {dimension_numbers = #tpu.dot_dimension_numbers<[1], [0], [0], [1], [0, 0, 1, 1], [], []>} : vector<32x64xbf16>, vector<64x256xbf16>, vector<32x256xf32> -> vector<32x256xf32>
    %55 = arith.mulf %54, %37 : vector<32x256xf32>
    %56 = arith.truncf %55 : vector<32x256xf32> to vector<32x256xbf16>
    %c0_20 = arith.constant 0 : index
    %c0_21 = arith.constant 0 : index
    %57 = vector.load %arg7[%c0_20, %c0_21] : memref<256x32xbf16, #tpu.memory_space<vmem>>, vector<256x32xbf16>
    %cst_22 = arith.constant dense<0.000000e+00> : vector<32x32xf32>
    %58 = tpu.matmul %56, %57, %cst_22 {dimension_numbers = #tpu.dot_dimension_numbers<[1], [0], [0], [1], [0, 0, 1, 1], [], []>} : vector<32x256xbf16>, vector<256x32xbf16>, vector<32x32xf32> -> vector<32x32xf32>
    %59 = vector.extract_strided_slice %0 {offsets = [0, 64], sizes = [1, 32], strides = [1, 1]} : vector<1x128xf32> to vector<1x32xf32>
    %60 = vector.extract_strided_slice %0 {offsets = [0, 96], sizes = [1, 32], strides = [1, 1]} : vector<1x128xf32> to vector<1x32xf32>
    %cst_23 = arith.constant dense<0.000000e+00> : vector<32xf32>
    %61 = vector.multi_reduction <add>, %58, %cst_23 [1] : vector<32x32xf32> to vector<32xf32>
    %62 = vector.shape_cast %61 : vector<32xf32> to vector<32x1xf32>
    %cst_24 = arith.constant 3.200000e+01 : f32
    %63 = vector.broadcast %cst_24 : f32 to vector<32x1xf32>
    %64 = arith.divf %62, %63 : vector<32x1xf32>
    %65 = vector.broadcast %64 : vector<32x1xf32> to vector<32x32xf32>
    %66 = arith.subf %58, %65 : vector<32x32xf32>
    %67 = arith.mulf %66, %66 : vector<32x32xf32>
    %cst_25 = arith.constant dense<0.000000e+00> : vector<32xf32>
    %68 = vector.multi_reduction <add>, %67, %cst_25 [1] : vector<32x32xf32> to vector<32xf32>
    %69 = vector.shape_cast %68 : vector<32xf32> to vector<32x1xf32>
    %cst_26 = arith.constant 3.200000e+01 : f32
    %70 = vector.broadcast %cst_26 : f32 to vector<32x1xf32>
    %71 = arith.divf %69, %70 : vector<32x1xf32>
    %72 = vector.broadcast %64 : vector<32x1xf32> to vector<32x32xf32>
    %73 = arith.subf %58, %72 : vector<32x32xf32>
    %cst_27 = arith.constant 9.99999974E-6 : f32
    %74 = vector.broadcast %cst_27 : f32 to vector<32x1xf32>
    %75 = arith.addf %71, %74 : vector<32x1xf32>
    %76 = math.rsqrt %75 : vector<32x1xf32>
    %77 = vector.broadcast %76 : vector<32x1xf32> to vector<32x32xf32>
    %78 = arith.mulf %73, %77 : vector<32x32xf32>
    %79 = vector.broadcast %59 : vector<1x32xf32> to vector<32x32xf32>
    %80 = arith.mulf %78, %79 : vector<32x32xf32>
    %81 = vector.broadcast %60 : vector<1x32xf32> to vector<32x32xf32>
    %82 = arith.addf %80, %81 : vector<32x32xf32>
    %c0_28 = arith.constant 0 : index
    %c0_29 = arith.constant 0 : index
    %83 = vector.load %arg8[%c0_28, %c0_29] : memref<128x128xf32, #tpu.memory_space<vmem>>, vector<128x128xf32>
    %84 = vector.extract_strided_slice %82 {offsets = [0, 0], sizes = [8, 32], strides = [1, 1]} : vector<32x32xf32> to vector<8x32xf32>
    %85 = vector.extract_strided_slice %83 {offsets = [0, 0], sizes = [32, 128], strides = [1, 1]} : vector<128x128xf32> to vector<32x128xf32>
    %cst_30 = arith.constant dense<0.000000e+00> : vector<8x128xf32>
    %86 = tpu.matmul %84, %85, %cst_30 {dimension_numbers = #tpu.dot_dimension_numbers<[1], [0], [0], [1], [0, 0, 1, 1], [], []>} : vector<8x32xf32>, vector<32x128xf32>, vector<8x128xf32> -> vector<8x128xf32>
    %87 = vector.extract_strided_slice %82 {offsets = [8, 0], sizes = [8, 32], strides = [1, 1]} : vector<32x32xf32> to vector<8x32xf32>
    %88 = vector.extract_strided_slice %83 {offsets = [32, 0], sizes = [32, 128], strides = [1, 1]} : vector<128x128xf32> to vector<32x128xf32>
    %cst_31 = arith.constant dense<0.000000e+00> : vector<8x128xf32>
    %89 = tpu.matmul %87, %88, %cst_31 {dimension_numbers = #tpu.dot_dimension_numbers<[1], [0], [0], [1], [0, 0, 1, 1], [], []>} : vector<8x32xf32>, vector<32x128xf32>, vector<8x128xf32> -> vector<8x128xf32>
    %90 = arith.addf %86, %89 : vector<8x128xf32>
    %91 = vector.extract_strided_slice %82 {offsets = [16, 0], sizes = [8, 32], strides = [1, 1]} : vector<32x32xf32> to vector<8x32xf32>
    %92 = vector.extract_strided_slice %83 {offsets = [64, 0], sizes = [32, 128], strides = [1, 1]} : vector<128x128xf32> to vector<32x128xf32>
    %cst_32 = arith.constant dense<0.000000e+00> : vector<8x128xf32>
    %93 = tpu.matmul %91, %92, %cst_32 {dimension_numbers = #tpu.dot_dimension_numbers<[1], [0], [0], [1], [0, 0, 1, 1], [], []>} : vector<8x32xf32>, vector<32x128xf32>, vector<8x128xf32> -> vector<8x128xf32>
    %94 = arith.addf %90, %93 : vector<8x128xf32>
    %95 = vector.extract_strided_slice %82 {offsets = [24, 0], sizes = [8, 32], strides = [1, 1]} : vector<32x32xf32> to vector<8x32xf32>
    %96 = vector.extract_strided_slice %83 {offsets = [96, 0], sizes = [32, 128], strides = [1, 1]} : vector<128x128xf32> to vector<32x128xf32>
    %cst_33 = arith.constant dense<0.000000e+00> : vector<8x128xf32>
    %97 = tpu.matmul %95, %96, %cst_33 {dimension_numbers = #tpu.dot_dimension_numbers<[1], [0], [0], [1], [0, 0, 1, 1], [], []>} : vector<8x32xf32>, vector<32x128xf32>, vector<8x128xf32> -> vector<8x128xf32>
    %98 = arith.addf %94, %97 : vector<8x128xf32>
    %c0_34 = arith.constant 0 : index
    %c0_35 = arith.constant 0 : index
    %99 = vector.load %arg9[%c0_34, %c0_35] : memref<8x128xf32, #tpu.memory_space<vmem>>, vector<8x128xf32>
    tpu.vector_store %arg9[%c0_34, %c0_35], %98 {strides = array<i32>} : memref<8x128xf32, #tpu.memory_space<vmem>>, vector<8x128xf32>,
    return
  }
  func.func @transform_0(%arg0: i32) -> (i32, i32) {
    %c0_i32 = arith.constant 0 : i32
    %c0_i32_0 = arith.constant 0 : i32
    return %arg0, %c0_i32 : i32, i32
  }
  func.func @transform_1(%arg0: i32) -> (i32, i32) {
    %c0_i32 = arith.constant 0 : i32
    %c0_i32_0 = arith.constant 0 : i32
    %c0_i32_1 = arith.constant 0 : i32
    return %c0_i32, %c0_i32_0 : i32, i32
  }
  func.func @transform_2(%arg0: i32) -> (i32, i32) {
    %c0_i32 = arith.constant 0 : i32
    %c0_i32_0 = arith.constant 0 : i32
    %c0_i32_1 = arith.constant 0 : i32
    return %c0_i32, %c0_i32_0 : i32, i32
  }
  func.func @transform_3(%arg0: i32) -> (i32, i32) {
    %c0_i32 = arith.constant 0 : i32
    %c0_i32_0 = arith.constant 0 : i32
    %c0_i32_1 = arith.constant 0 : i32
    return %c0_i32, %c0_i32_0 : i32, i32
  }
  func.func @transform_4(%arg0: i32) -> (i32, i32) {
    %c0_i32 = arith.constant 0 : i32
    %c0_i32_0 = arith.constant 0 : i32
    %c0_i32_1 = arith.constant 0 : i32
    return %c0_i32, %c0_i32_0 : i32, i32
  }
  func.func @transform_5(%arg0: i32) -> (i32, i32) {
    %c0_i32 = arith.constant 0 : i32
    %c0_i32_0 = arith.constant 0 : i32
    %c0_i32_1 = arith.constant 0 : i32
    return %c0_i32, %c0_i32_0 : i32, i32
  }
  func.func @transform_6(%arg0: i32) -> (i32, i32) {
    %c0_i32 = arith.constant 0 : i32
    %c0_i32_0 = arith.constant 0 : i32
    %c0_i32_1 = arith.constant 0 : i32
    return %c0_i32, %c0_i32_0 : i32, i32
  }
  func.func @transform_7(%arg0: i32) -> (i32, i32) {
    %c0_i32 = arith.constant 0 : i32
    %c0_i32_0 = arith.constant 0 : i32
    %c0_i32_1 = arith.constant 0 : i32
    return %c0_i32, %c0_i32_0 : i32, i32
  }
  func.func @transform_8(%arg0: i32) -> (i32, i32) {
    %c0_i32 = arith.constant 0 : i32
    %c0_i32_0 = arith.constant 0 : i32
    return %arg0, %c0_i32 : i32, i32
  }
}

</mosaic_0001>

<bundles_post_ra>
// kernel: tpu_custom_call.1
= control target key start
LH: loop header
LB: loop body
LE: loop exit
PB: predicated region body
PF: predicated region fallthrough
CT: control target
= control target key end

     0   :  { %13 = vsyncpa [#allocation3], 0  ;;  %s2270_s0 = inlined_call_operand.vmem [shape: f32[32,64], index: 0, kind: input, shape index: {}]   ;;  %s2271_s1 = inlined_call_operand.vmem [shape: f32[1,128], index: 1, kind: input, shape index: {}]   ;;  %s2272_s2 = inlined_call_operand.vmem [shape: bf16[32,768], index: 2, kind: input, shape index: {}]   ;;  %s2273_s3 = inlined_call_operand.vmem [shape: bf16[256,64], index: 3, kind: input, shape index: {}]   ;;  %s2274_s4 = inlined_call_operand.hbm [shape: bf16[64,64], index: 4, kind: input, shape index: {}]   ;;  %s2275_s5 = inlined_call_operand.vmem [shape: bf16[64,256], index: 5, kind: input, shape index: {}]   ;;  %s2276_s6 = inlined_call_operand.vmem [shape: bf16[256,32], index: 6, kind: input, shape index: {}]   ;;  %s2277_s7 = inlined_call_operand.vmem [shape: f32[128,128], index: 7, kind: input, shape index: {}]   ;;  %s2278_s8 = inlined_call_operand.hbm [shape: f32[8,128], index: 8, kind: output, shape index: {}]  }
   0x1   :  { %14 = vsyncpa [#allocation4], 0  ;;  %s1794_s27 = smov [#allocation2]   ;;  %s1746_s9 = scalar_lea.hbm %s2274_s4, 512 }
   0x2   :  { %s28_s28 = sshll.u32 %s1794_s27, 4  ;;  %p1747_p0 = scmp.ne.s32.totalorder %s2274_s4, %s1746_s9  ;;  %s29_s28 = int_to_ptr.vmem [resolvable:$true] %s28_s28 }
   0x3   :  { %p1750_p1 = scmp.lt.u32.totalorder %s1746_s9, %s2274_s4 }
   0x5   :  { %p1752_p2 = pnand %p1750_p1, %p1747_p0 }
   0x7   :  { %1755 = shalt.err (!%p1752_p2)
}
   0x8   :  { %s1756_s14 = scalar_lea.vmem %s29_s28, 512  ;;  %p1761_p4 = scmp.lt.s32.totalorder %s29_s28, %s29_s28 }
   0x9   :  { %p1757_p3 = scmp.ne.s32.totalorder %s29_s28, %s1756_s14  ;;  %p1762_p5 = scmp.lt.s32.totalorder %s1756_s14, %s1756_s14 }
   0xb   :  { %p1763_p6 = por %p1762_p5, %p1761_p4 }
   0xd   :  { %p1764_p7 = pnand %p1763_p6, %p1757_p3 }
   0xf   :  { %1767 = shalt.err (!%p1764_p7)
}
  0x10   :  { %s1795_s15 = smov 64   ;;  %s1796_s16 = smov 4  }
  0x11   :  { %34 = dma.hbm_to_vmem [thread:$0]  %s2274_s4, 512, %s29_s28, [#allocation3], %s1795_s15, %s1795_s15, %s1796_s16  }
  0x12   :  { %1790 = dma.done.wait [#allocation3], 512  }
  0x13   :  { %1791 = vsyncadd [#allocation3], 4294966784  ;;  %vm50_vm0 = vcmask 261120   ;;  %v1867_v0 = vld [vmem:[%s2270_s0] sm:$0xff]  ;;  %v1872_v1 = vld [vmem:[%s2270_s0 + $0x10] sm:$0xff]  ;;  %s1797_s27 = smov 96  }
  0x14   :  { %v1877_v2 = vld [vmem:[%s2270_s0 + $0x8] sm:$0xff]  ;;  %v51_v3 = vsel %vm50_vm0, %v1867_v0, 0.0  ;;  %v57_v4 = vsel %vm50_vm0, %v1872_v1, 0.0  ;;  %v49_v5 = vld [vmem:[%s2270_s0 + $0x18] sm:$0xff]  ;;  %v1915_v28 = vld [vmem:[%s2271_s1] ss:$0 sm:$0xff] }
  0x15   :  { %52 = vadd.xlane.f32.xlu0 %v51_v3  ;;  %58 = vadd.xlane.f32.xlu1 %v57_v4  ;;  %v54_v6 = vsel %vm50_vm0, %v1877_v2, 0.0  ;;  %v60_v7 = vsel %vm50_vm0, %v49_v5, 0.0  ;;  %v1648_v29 = vld [vmem:[%s2272_s2 + $0x4] ss:$24 sps:$4 sm:$0xff]   ;;  %v1652_v31 = vld [vmem:[%s2272_s2] ss:$24 sps:$4 sm:$0xff]  }
  0x16   :  { %v1650_v30 = vld [vmem:[%s2272_s2 + $0xc] ss:$24 sps:$4 sm:$0xff]   ;;  %v1653_v32 = vld [vmem:[%s2272_s2 + $0x8] ss:$24 sps:$4 sm:$0xff]   ;;  %201 = vmatprep.subr.bf16.mxu0 %v1648_v29  ;;  %v1656_v34 = vld [vmem:[%s2272_s2 + $0x3c] ss:$24 sps:$4 sm:$0xff]  }
  0x17   :  { %254 = vmatprep.subr.bf16.mxu1 %v1650_v30  ;;  %202 = vmatpush1.bf16.msra.mxu0 %v1652_v31  ;;  %v1654_v33 = vld [vmem:[%s2272_s2 + $0x34] ss:$24 sps:$4 sm:$0xff]   ;;  %v1658_v35 = vld [vmem:[%s2272_s2 + $0x30] ss:$24 sps:$4 sm:$0xff]   ;;  %v1798_v37 = vmov 0   ;;  %v1666_v39 = vld [vmem:[%s2273_s3 + $0x40] sm:$0xff]  }
  0x18   :  { %255 = vmatpush1.bf16.msra.mxu1 %v1653_v32  ;;  %v1659_v36 = vld [vmem:[%s2272_s2 + $0x38] ss:$24 sps:$4 sm:$0xff]   ;;  %203 = vmatprep.subr.bf16.mxu0 %v1654_v33  ;;  %v1662_v38 = vld [vmem:[%s2272_s2 + $0x14] ss:$24 sps:$4 sm:$0xff]   ;;  %v1799_v40 = vmov 32   ;;  %vm585_vm1 = vcmask 523264  }
  0x19   :  { %55 = vadd.xlane.f32.xlu0 %v54_v6  ;;  %61 = vadd.xlane.f32.xlu1 %v60_v7  ;;  %v1660_v4 = vld [vmem:[%s2272_s2 + $0x10] ss:$24 sps:$4 sm:$0xff]   ;;  %v1665_v6 = vld [vmem:[%s2272_s2 + $0x44] ss:$24 sps:$4 sm:$0xff]   ;;  %vm1802_vm2 = vmmov 0  }
  0x1a   :  { %256 = vmatprep.subr.bf16.mxu1 %v1656_v34  ;;  %233 = vmatprep.mubr.bf16.mxu0 %v1798_v37  ;;  %v1668_v7 = vld [vmem:[%s2273_s3 + $0x48] sm:$0xff]  }
  0x1b   :  { %204 = vmatpush1.bf16.msra.mxu0 %v1658_v35  ;;  %286 = vmatprep.mubr.bf16.mxu1 %v1798_v37 }
  0x1c   :  { %257 = vmatpush1.bf16.msra.mxu1 %v1659_v36  ;;  %307 = vmatprep.subr.bf16.mxu0 %v1662_v38 }
  0x1d   :  { %1646 = vset.pattern.permute.xlu1 %v1799_v40  ;;  %1647 = vset.pattern.permute.xlu0 %v1799_v40 }
  0x1e   :  { %1468 = vmatprep.subr.bf16.mxu1 %v1666_v39 }
  0xa2   :  { %v53_v8 = vpop.xlane.xlu0 %52  ;;  %v59_v9 = vpop.xlane.xlu1 %58 }
  0xa3   :  { %v64_v10 = vmul.f32 0.03125, %v53_v8  ;;  %v66_v11 = vmul.f32 0.03125, %v59_v9 }
  0xa5   :  { %v1890_v12 = vsub.f32 %v1867_v0, %v64_v10  ;;  %v1893_v13 = vsub.f32 %v1872_v1, %v66_v11  ;;  %v1663_v10 = vld [vmem:[%s2272_s2 + $0x40] ss:$24 sps:$4 sm:$0xff]   ;;  %v1669_v11 = vld [vmem:[%s2273_s3 + $0x8] sm:$0xff]  }
  0xa6   :  { %v56_v14 = vpop.xlane.xlu0 %55  ;;  %v62_v15 = vpop.xlane.xlu1 %61 }
  0xa7   :  { %v65_v16 = vmul.f32 0.03125, %v56_v14  ;;  %v67_v17 = vmul.f32 0.03125, %v62_v15  ;;  %v72_v18 = vmul.f32 %v1890_v12, %v1890_v12  ;;  %v74_v19 = vmul.f32 %v1893_v13, %v1893_v13  ;;  %v1671_v15 = vld [vmem:[%s2273_s3 + $0x10] sm:$0xff]  }
  0xa9   :  { %v1900_v20 = vsub.f32 %v1877_v2, %v65_v16  ;;  %v1902_v21 = vsub.f32 %v49_v5, %v67_v17  ;;  %v76_v22 = vsel %vm50_vm0, %v72_v18, 0.0  ;;  %v82_v23 = vsel %vm50_vm0, %v74_v19, 0.0  ;;  %v1672_v16 = vld [vmem:[%s2273_s3 + $0x58] sm:$0xff]   ;;  %v1674_v18 = vld [vmem:[%s2273_s3 + $0x60] sm:$0xff]  }
  0xaa   :  { %77 = vadd.xlane.f32.xlu0 %v76_v22  ;;  %v1673_v17 = vld [vmem:[%s2273_s3 + $0x18] sm:$0xff]   ;;  %v1675_v19 = vld [vmem:[%s2273_s3 + $0x20] sm:$0xff]   ;;  %v1678_v22 = vld [vmem:[%s2273_s3 + $0x70] sm:$0xff]  }
  0xab   :  { %v73_v24 = vmul.f32 %v1900_v20, %v1900_v20  ;;  %v75_v25 = vmul.f32 %v1902_v21, %v1902_v21 }
  0xad   :  { %v79_v26 = vsel %vm50_vm0, %v73_v24, 0.0  ;;  %v85_v27 = vsel %vm50_vm0, %v75_v25, 0.0  ;;  %v1680_v24 = vld [vmem:[%s2273_s3 + $0x78] sm:$0xff]  }
  0xae   :  { %83 = vadd.xlane.f32.xlu0 %v82_v23  ;;  %80 = vadd.xlane.f32.xlu1 %v79_v26  ;;  %v1679_v23 = vld [vmem:[%s2273_s3 + $0x30] sm:$0xff]   ;;  %v1681_v25 = vld [vmem:[%s2273_s3 + $0x38] sm:$0xff]  }
  0xb2   :  { %86 = vadd.xlane.f32.xlu1 %v85_v27 }
  0xc3   :  { %362 = vperm.xlu1 %1646, %v1867_v0  }
  0xc4   :  { %114 = vrot.lane.b32.xlu0 %v1915_v28, %s1797_s27 }
  0xc7   :  { %367 = vperm.xlu1 %1646, %v1877_v2  }
  0xc8   :  { %377 = vperm.xlu0 %1647, %v49_v5   ;;  %v1667_v5 = vld [vmem:[%s2273_s3] sm:$0xff]  }
  0xcb   :  { %372 = vperm.xlu1 %1646, %v1872_v1  }
 0x137   :  { %v78_v41 = vpop.xlane.xlu0 %77 }
 0x138   :  { %v88_v42 = vmul.f32 0.03125, %v78_v41 }
 0x13a   :  { %v92_v43 = vadd.f32 1e-05, %v88_v42 }
 0x13b   :  { %v81_v44 = vpop.xlane.xlu1 %80  ;;  %v84_v45 = vpop.xlane.xlu0 %83 }
 0x13c   :  { %1714 = vrsqrt.f32 %v92_v43  ;;  %v89_v46 = vmul.f32 0.03125, %v81_v44  ;;  %v90_v47 = vmul.f32 0.03125, %v84_v45 }
 0x13e   :  { %v93_v48 = vadd.f32 1e-05, %v89_v46  ;;  %v94_v49 = vadd.f32 1e-05, %v90_v47 }
 0x13f   :  { %v87_v50 = vpop.xlane.xlu1 %86  ;;  %v115_v59 = vpop.permute.xlu0 %114 }
 0x140   :  { %1716 = vrsqrt.f32 %v93_v48  ;;  %v91_v51 = vmul.f32 0.03125, %v87_v50 }
 0x141   :  { %1718 = vrsqrt.f32 %v94_v49 }
 0x142   :  { %v95_v52 = vadd.f32 1e-05, %v91_v51 }
 0x143   :  { %v2025_v26 = vpop.permute.xlu1 %362 }
 0x144   :  { %1720 = vrsqrt.f32 %v95_v52 }
 0x146   :  { %v1715_v53 = vpop.eup %1714 }
 0x147   :  { %v100_v54 = vmul.f32 %v1715_v53, %v1890_v12  ;;  %v1670_v12 = vld [vmem:[%s2273_s3 + $0x50] sm:$0xff]   ;;  %v2027_v27 = vpop.permute.xlu1 %367  ;;  %v2035_v48 = vpop.permute.xlu0 %377 }
 0x149   :  { %v110_v57 = vmul.f32 %v1915_v28, %v100_v54 }
 0x14a   :  { %v1717_v55 = vpop.eup %1716 }
 0x14b   :  { %v101_v56 = vmul.f32 %v1717_v55, %v1900_v20  ;;  %v1719_v58 = vpop.eup %1718  ;;  %v117_v0 = vadd.f32 %v115_v59, %v110_v57  ;;  %v1676_v20 = vld [vmem:[%s2273_s3 + $0x68] sm:$0xff]   ;;  %v2033_v46 = vpop.permute.xlu1 %372 }
 0x14c   :  { %v102_v62 = vmul.f32 %v1719_v58, %v1893_v13 }
 0x14d   :  { %v111_v60 = vmul.f32 %v1915_v28, %v101_v56 }
 0x14e   :  { %v1721_v61 = vpop.eup %1720  ;;  %v112_v8 = vmul.f32 %v1915_v28, %v102_v62 }
 0x14f   :  { %v103_v63 = vmul.f32 %v1721_v61, %v1902_v21  ;;  %v118_v1 = vadd.f32 %v115_v59, %v111_v60  ;;  %v1677_v21 = vld [vmem:[%s2273_s3 + $0x28] sm:$0xff]  }
 0x150   :  { %v119_v13 = vadd.f32 %v115_v59, %v112_v8 }
 0x151   :  { %v113_v2 = vmul.f32 %v1915_v28, %v103_v63  ;;  %v121_v3 = vpack.c.bf16 %v118_v1, %v117_v0 }
 0x153   :  { %1410 = vmatmul.mubr.msk.bf16.vlgmr.msra.gmra.mrb[0].mxu0 %vm50_vm0, %v121_v3  ;;  %1412 = vmatmul.mubr.msk.bf16.vlgmr.msra.gmra.mrb[0].mxu1 %vm50_vm0, %v121_v3  ;;  %v120_v9 = vadd.f32 %v115_v59, %v113_v2 }
 0x154   :  { %243 = vmatprep.mubr.bf16.mxu0 %v1798_v37  ;;  %296 = vmatprep.mubr.bf16.mxu1 %v1798_v37 }
 0x155   :  { %308 = vmatpush1.bf16.msra.mxu0 %v1660_v4  ;;  %1469 = vmatpush3.bf16.msra.mxu1 %v1667_v5  ;;  %v122_v14 = vpack.c.bf16 %v120_v9, %v119_v13 }
 0x156   :  { %309 = vmatprep.subr.bf16.mxu0 %v1665_v6  ;;  %1470 = vmatprep.subr.bf16.mxu1 %v1668_v7 }
 0x159   :  { %310 = vmatpush1.bf16.msra.mxu0 %v1663_v10  ;;  %1471 = vmatpush3.bf16.msra.mxu1 %v1669_v11 }
 0x15a   :  { %1472 = vmatprep.subr.bf16.mxu1 %v1670_v12 }
 0x15b   :  { %1411 = vmatmul.mubr.msk.bf16.gmra.mrb[4].mxu0 %vm50_vm0, %v122_v14  ;;  %1413 = vmatmul.mubr.msk.bf16.gmra.mrb[4].mxu1 %vm50_vm0, %v122_v14 }
 0x15c   :  { %339 = vmatprep.mubr.bf16.mxu0 %v1798_v37 }
 0x15d   :  { %1473 = vmatpush3.bf16.msra.mxu1 %v1671_v15 }
 0x15e   :  { %1474 = vmatprep.subr.bf16.mxu1 %v1672_v16 }
 0x161   :  { %1475 = vmatpush3.bf16.msra.mxu1 %v1673_v17 }
 0x162   :  { %1476 = vmatprep.subr.bf16.mxu1 %v1674_v18 }
 0x163   :  { %1414 = vmatmul.mubr.msk.bf16.vlgmr.msra.gmra.mrb[8].mxu0 %vm50_vm0, %v121_v3 }
 0x164   :  { %349 = vmatprep.mubr.bf16.mxu0 %v1798_v37 }
 0x165   :  { %1477 = vmatpush3.bf16.msra.mxu1 %v1675_v19 }
 0x166   :  { %1478 = vmatprep.subr.bf16.mxu1 %v1676_v20 }
 0x169   :  { %1479 = vmatpush3.bf16.msra.mxu1 %v1677_v21 }
 0x16a   :  { %1480 = vmatprep.subr.bf16.mxu1 %v1678_v22 }
 0x16b   :  { %1415 = vmatmul.mubr.msk.bf16.gmra.mrb[12].mxu0 %vm50_vm0, %v122_v14 }
 0x16d   :  { %1481 = vmatpush3.bf16.msra.mxu1 %v1679_v23 }
 0x16e   :  { %1482 = vmatprep.subr.bf16.mxu1 %v1680_v24 }
 0x171   :  { %1483 = vmatpush3.bf16.msra.mxu1 %v1681_v25 }
 0x226   :  { %v235_v29 = vpop.f32.mrb[0].mxu0  ;;  %v288_v30 = vpop.f32.mrb[0].mxu1 }
 0x227   :  { %v380_v31 = vmul.f32 %v2025_v26, %v288_v30  ;;  %v237_v32 = vpop.f32.mrb[1].mxu0  ;;  %v290_v33 = vpop.f32.mrb[1].mxu1 }
 0x228   :  { %v381_v34 = vmul.f32 %v2025_v26, %v290_v33  ;;  %v239_v35 = vpop.f32.mrb[2].mxu0  ;;  %v292_v36 = vpop.f32.mrb[2].mxu1  ;;  %v1684_v33 = vld [vmem:[#allocation2 + $0x10] sm:$0xff]  }
 0x229   :  { %v396_v38 = vmul.f32 %v380_v31, %v235_v29  ;;  %v382_v39 = vmul.f32 %v2027_v27, %v292_v36  ;;  %v241_v40 = vpop.f32.mrb[3].mxu0  ;;  %v294_v41 = vpop.f32.mrb[3].mxu1  ;;  %v1682_v31 = vld [vmem:[#allocation2] sm:$0xff]  }
 0x22a   :  { %v397_v42 = vmul.f32 %v381_v34, %v237_v32  ;;  %v383_v43 = vmul.f32 %v2027_v27, %v294_v41  ;;  %1550 = vmatprep.subr.bf16.mxu0 %v1682_v31  ;;  %v1683_v32 = vld [vmem:[#allocation2 + $0x8] sm:$0xff]   ;;  %v1685_v34 = vld [vmem:[#allocation2 + $0x18] sm:$0xff]  }
 0x22b   :  { %v398_v44 = vmul.f32 %v382_v39, %v239_v35  ;;  %1551 = vmatpush3.bf16.msra.mxu0 %v1682_v31 }
 0x22c   :  { %v399_v45 = vmul.f32 %v383_v43, %v241_v40  ;;  %1552 = vmatprep.subr.bf16.mxu0 %v1683_v32 }
 0x22d   :  { %v404_v47 = vpack.c.bf16 %v398_v44, %v396_v38 }
 0x22e   :  { %v245_v49 = vpop.f32.mrb[4].mxu0  ;;  %v298_v50 = vpop.f32.mrb[4].mxu1  ;;  %v405_v51 = vpack.c.bf16 %v399_v45, %v397_v42 }
 0x22f   :  { %v384_v52 = vmul.f32 %v2033_v46, %v298_v50  ;;  %v247_v53 = vpop.f32.mrb[5].mxu0  ;;  %v300_v54 = vpop.f32.mrb[5].mxu1  ;;  %1553 = vmatpush3.bf16.msra.mxu0 %v1683_v32 }
 0x230   :  { %v385_v55 = vmul.f32 %v2033_v46, %v300_v54  ;;  %v249_v56 = vpop.f32.mrb[6].mxu0  ;;  %v302_v57 = vpop.f32.mrb[6].mxu1  ;;  %568 = vmatprep.mubr.bf16.mxu1 %v405_v51  ;;  %1554 = vmatprep.subr.bf16.mxu0 %v1684_v33 }
 0x231   :  { %v400_v58 = vmul.f32 %v384_v52, %v245_v49  ;;  %v386_v59 = vmul.f32 %v2035_v48, %v302_v57  ;;  %v251_v60 = vpop.f32.mrb[7].mxu0  ;;  %v304_v61 = vpop.f32.mrb[7].mxu1  ;;  %569 = vmatmul.mubr.bf16.vlgmr.msra.gmra.mrb[8].mxu1 %v404_v47  ;;  %v1686_v57 = vld [vmem:[%s2275_s5] ss:$8 sps:$4 sm:$0xff]  }
 0x232   :  { %v401_v62 = vmul.f32 %v385_v55, %v247_v53  ;;  %v387_v63 = vmul.f32 %v2035_v48, %v304_v61  ;;  %v1692_v61 = vld [vmem:[%s2275_s5 + $0x20] ss:$8 sps:$4 sm:$0xff]  }
 0x233   :  { %v402_v0 = vmul.f32 %v386_v59, %v249_v56  ;;  %1555 = vmatpush3.bf16.msra.mxu0 %v1684_v33  ;;  %v1688_v56 = vld [vmem:[%s2275_s5 + $0x4] ss:$8 sps:$4 sm:$0xff]   ;;  %v1689_v59 = vld [vmem:[%s2275_s5 + $0x10] ss:$8 sps:$4 sm:$0xff]  }
 0x234   :  { %v403_v1 = vmul.f32 %v387_v63, %v251_v60  ;;  %1556 = vmatprep.subr.bf16.mxu0 %v1685_v34  ;;  %v1694_v60 = vld [vmem:[%s2275_s5 + $0x24] ss:$8 sps:$4 sm:$0xff]   ;;  %v1695_v63 = vld [vmem:[%s2275_s5 + $0x30] ss:$8 sps:$4 sm:$0xff]  }
 0x235   :  { %v406_v2 = vpack.c.bf16 %v402_v0, %v400_v58  ;;  %v1691_v58 = vld [vmem:[%s2275_s5 + $0x14] ss:$8 sps:$4 sm:$0xff]   ;;  %v1698_v0 = vld [vmem:[%s2276_s6 + $0x40] sm:$0xff]  }
 0x236   :  { %v2041_v3 = vpop.f32.mrb[8].mxu0  ;;  %v407_v4 = vpack.c.bf16 %v403_v1, %v401_v62  ;;  %v1697_v62 = vld [vmem:[%s2275_s5 + $0x34] ss:$8 sps:$4 sm:$0xff]   ;;  %v1699_v1 = vld [vmem:[%s2276_s6] sm:$0xff]   ;;  %1502 = vmatprep.subr.bf16.mxu1 %v1698_v0  ;;  %s1801_s5 = smov 32  }
 0x237   :  { %v2043_v5 = vpop.f32.mrb[9].mxu0  ;;  %1557 = vmatpush3.bf16.msra.mxu0 %v1685_v34  ;;  %1503 = vmatpush3.bf16.msra.mxu1 %v1699_v1 }
 0x238   :  { %v2045_v6 = vpop.f32.mrb[10].mxu0  ;;  %576 = vmatprep.mubr.bf16.mxu1 %v407_v4  ;;  %763 = vmatprep.subr.bf16.mxu0 %v1688_v56  ;;  %v1701_v4 = vld [vmem:[%s2276_s6 + $0x8] sm:$0xff]  }
 0x239   :  { %v2047_v7 = vpop.f32.mrb[11].mxu0  ;;  %577 = vmatmul.mubr.bf16.gmra.mrb[12].mxu1 %v406_v2  ;;  %v1700_v2 = vld [vmem:[%s2276_s6 + $0x48] sm:$0xff]  }
 0x23a   :  { %1504 = vmatprep.subr.bf16.mxu1 %v1700_v2 }
 0x23b   :  { %1505 = vmatpush3.bf16.msra.mxu1 %v1701_v4 }
 0x23e   :  { %v2049_v8 = vpop.f32.mrb[12].mxu0 }
 0x23f   :  { %v2051_v9 = vpop.f32.mrb[13].mxu0 }
 0x240   :  { %v2053_v10 = vpop.f32.mrb[14].mxu0 }
 0x241   :  { %v2055_v11 = vpop.f32.mrb[15].mxu0 }
 0x304   :  { %v1484_v12 = vpop.f32.mrb[8].mxu1 }
 0x305   :  { %v1485_v13 = vpop.f32.mrb[9].mxu1 }
 0x306   :  { %v1486_v14 = vadd.f32 %v1485_v13, %v1484_v12  ;;  %v1487_v15 = vpop.f32.mrb[10].mxu1  ;;  %v1702_v12 = vld [vmem:[%s2276_s6 + $0x50] sm:$0xff]  }
 0x307   :  { %v1488_v16 = vpop.f32.mrb[11].mxu1  ;;  %v1703_v13 = vld [vmem:[%s2276_s6 + $0x10] sm:$0xff]   ;;  %1506 = vmatprep.subr.bf16.mxu1 %v1702_v12 }
 0x308   :  { %v1489_v17 = vadd.f32 %v1488_v16, %v1487_v15  ;;  %v586_v18 = vsel %vm585_vm1, %v1486_v14, -inf  ;;  %1507 = vmatpush3.bf16.msra.mxu1 %v1703_v13  ;;  %v1705_v15 = vld [vmem:[%s2276_s6 + $0x18] sm:$0xff]   ;;  %v1706_v16 = vld [vmem:[%s2276_s6 + $0x60] sm:$0xff]  }
 0x309   :  { %587 = vmax.xlane.f32.xlu1 %v586_v18  ;;  %v1708_v18 = vld [vmem:[%s2276_s6 + $0x68] sm:$0xff]  }
 0x30a   :  { %v589_v19 = vsel %vm585_vm1, %v1489_v17, -inf }
 0x30b   :  { %590 = vmax.xlane.f32.xlu0 %v589_v19  ;;  %v1709_v19 = vld [vmem:[%s2276_s6 + $0x28] sm:$0xff]  }
 0x30c   :  { %v1490_v20 = vpop.f32.mrb[12].mxu1 }
 0x30d   :  { %v1491_v21 = vpop.f32.mrb[13].mxu1 }
 0x30e   :  { %v1492_v22 = vadd.f32 %v1491_v21, %v1490_v20  ;;  %v1493_v23 = vpop.f32.mrb[14].mxu1 }
 0x30f   :  { %v1494_v24 = vpop.f32.mrb[15].mxu1 }
 0x310   :  { %v1495_v25 = vadd.f32 %v1494_v24, %v1493_v23  ;;  %v592_v29 = vsel %vm585_vm1, %v1492_v22, -inf }
 0x311   :  { %593 = vmax.xlane.f32.xlu0 %v592_v29 }
 0x312   :  { %v595_v30 = vsel %vm585_vm1, %v1495_v25, -inf }
 0x313   :  { %596 = vmax.xlane.f32.xlu1 %v595_v30 }
 0x396   :  { %v588_v35 = vpop.xlane.xlu1 %587 }
 0x397   :  { %v598_v36 = vsub.f32 %v1486_v14, %v588_v35  ;;  %v1704_v14 = vld [vmem:[%s2276_s6 + $0x58] sm:$0xff]  }
 0x398   :  { %v591_v38 = vpop.xlane.xlu0 %590  ;;  %1508 = vmatprep.subr.bf16.mxu1 %v1704_v14 }
 0x399   :  { %v602_v39 = vmul.f32 1.442695, %v598_v36  ;;  %v599_v40 = vsub.f32 %v1489_v17, %v591_v38  ;;  %1509 = vmatpush3.bf16.msra.mxu1 %v1705_v15  ;;  %v1707_v17 = vld [vmem:[%s2276_s6 + $0x20] sm:$0xff]   ;;  %v1710_v38 = vld [vmem:[%s2276_s6 + $0x70] sm:$0xff]  }
 0x39a   :  { %1510 = vmatprep.subr.bf16.mxu1 %v1706_v16 }
 0x39b   :  { %v604_v41 = vmul.f32 1.442695, %v599_v40  ;;  %1722 = vpow2.f32 %v602_v39  ;;  %v1711_v39 = vld [vmem:[%s2276_s6 + $0x30] sm:$0xff]   ;;  %v1712_v40 = vld [vmem:[%s2276_s6 + $0x78] sm:$0xff]  }
 0x39d   :  { %1724 = vpow2.f32 %v604_v41  ;;  %1511 = vmatpush3.bf16.msra.mxu1 %v1707_v17  ;;  %v388_v41 = vmul.f32 %v2025_v26, %v2041_v3  ;;  %v392_v3 = vmul.f32 %v2033_v46, %v2049_v8 }
 0x39e   :  { %v594_v42 = vpop.xlane.xlu0 %593  ;;  %1512 = vmatprep.subr.bf16.mxu1 %v1708_v18 }
 0x39f   :  { %v600_v43 = vsub.f32 %v1492_v22, %v594_v42  ;;  %v389_v42 = vmul.f32 %v2025_v26, %v2043_v5  ;;  %v393_v26 = vmul.f32 %v2033_v46, %v2051_v9 }
 0x3a0   :  { %v597_v44 = vpop.xlane.xlu1 %596 }
 0x3a1   :  { %v606_v45 = vmul.f32 1.442695, %v600_v43  ;;  %v601_v47 = vsub.f32 %v1495_v25, %v597_v44  ;;  %1513 = vmatpush3.bf16.msra.mxu1 %v1709_v19  ;;  %v390_v44 = vmul.f32 %v2027_v27, %v2045_v6  ;;  %v394_v6 = vmul.f32 %v2035_v48, %v2053_v10 }
 0x3a2   :  { %1514 = vmatprep.subr.bf16.mxu1 %v1710_v38 }
 0x3a3   :  { %v608_v49 = vmul.f32 1.442695, %v601_v47  ;;  %1726 = vpow2.f32 %v606_v45 }
 0x3a5   :  { %1728 = vpow2.f32 %v608_v49  ;;  %v2061_v50 = vpop.eup %1722  ;;  %1515 = vmatpush3.bf16.msra.mxu1 %v1711_v39  ;;  %v391_v49 = vmul.f32 %v2027_v27, %v2047_v7  ;;  %v395_v7 = vmul.f32 %v2035_v48, %v2055_v11 }
 0x3a6   :  { %1516 = vmatprep.subr.bf16.mxu1 %v1712_v40 }
 0x3a7   :  { %v2063_v51 = vpop.eup %1724 }
 0x3a8   :  { %v610_v52 = vpack.c.bf16 %v2063_v51, %v2061_v50 }
 0x3aa   :  { %1558 = vmatprep.mubr.msk.bf16.mxu0 %vm585_vm1, %v610_v52 }
 0x3ad   :  { %v1727_v53 = vpop.eup %1726 }
 0x3af   :  { %v1729_v54 = vpop.eup %1728 }
 0x3b0   :  { %v611_v55 = vpack.c.bf16 %v1729_v54, %v1727_v53 }
 0x3b2   :  { %1559 = vmatmul.mubr.msk.bf16.vlgmr.msra.gmra.mrb[16].mxu0 %vm585_vm1, %v611_v55 }
 0x3b3   :  { %795 = vmatprep.mubr.bf16.mxu0 %v1798_v37  ;;  %764 = vmatpush1.bf16.msra.mxu0 %v1686_v57 }
 0x3b4   :  { %765 = vmatprep.subr.bf16.mxu0 %v1691_v58 }
 0x3b7   :  { %766 = vmatpush1.bf16.msra.mxu0 %v1689_v59 }
 0x3b8   :  { %767 = vmatprep.subr.bf16.mxu0 %v1694_v60 }
 0x3bb   :  { %768 = vmatpush1.bf16.msra.mxu0 %v1692_v61 }
 0x3bc   :  { %769 = vmatprep.subr.bf16.mxu0 %v1697_v62 }
 0x3bf   :  { %770 = vmatpush1.bf16.msra.mxu0 %v1695_v63 }
 0x485   :  { %v1560_v20 = vpop.f32.mrb[16].mxu0 }
 0x486   :  { %1730 = vrcp.f32 %v1560_v20  ;;  %v684_v21 = vpop.f32.mrb[17].mxu0 }
 0x487   :  { %1732 = vrcp.f32 %v684_v21  ;;  %v1561_v22 = vpop.f32.mrb[18].mxu0 }
 0x488   :  { %1734 = vrcp.f32 %v1561_v22  ;;  %v687_v23 = vpop.f32.mrb[19].mxu0 }
 0x489   :  { %1736 = vrcp.f32 %v687_v23 }
 0x490   :  { %v1731_v24 = vpop.eup %1730 }
 0x491   :  { %v1733_v25 = vpop.eup %1732  ;;  %v705_v31 = vmul.f32 %v1731_v24, %v1727_v53 }
 0x492   :  { %v1735_v29 = vpop.eup %1734  ;;  %v703_v33 = vmul.f32 %v1733_v25, %v2061_v50 }
 0x493   :  { %v1737_v30 = vpop.eup %1736  ;;  %v706_v32 = vmul.f32 %v1735_v29, %v1729_v54 }
 0x494   :  { %v704_v34 = vmul.f32 %v1737_v30, %v2063_v51 }
 0x495   :  { %v708_v35 = vpack.c.bf16 %v706_v32, %v705_v31 }
 0x496   :  { %v707_v36 = vpack.c.bf16 %v704_v34, %v703_v33 }
 0x498   :  { %1446 = vmatmul.mubr.msk.bf16.vlgmr.msra.gmra.mrb[20].mxu0 %vm585_vm1, %v707_v36 }
 0x499   :  { %805 = vmatprep.mubr.bf16.mxu0 %v1798_v37  ;;  %v1713_v37 = vld [vmem:[%s2276_s6 + $0x38] sm:$0xff]  }
 0x49a   :  { %1517 = vmatpush3.bf16.msra.mxu1 %v1713_v37 }
 0x4a0   :  { %1447 = vmatmul.mubr.msk.bf16.gmra.mrb[24].mxu0 %vm585_vm1, %v708_v35 }
 0x56b   :  { %v797_v43 = vpop.f32.mrb[20].mxu0 }
 0x56c   :  { %v816_v45 = vmul.f32 %v797_v43, %v388_v41  ;;  %v799_v47 = vpop.f32.mrb[21].mxu0  ;;  %v1072_v43 = vld [vmem:[%s2277_s7 + $0x8] sm:$0xff] }
 0x56d   :  { %v817_v50 = vmul.f32 %v799_v47, %v389_v42  ;;  %v801_v51 = vpop.f32.mrb[22].mxu0  ;;  %v1071_v42 = vld [vmem:[%s2277_s7] sm:$0xff]  ;;  %v1073_v47 = vld [vmem:[%s2277_s7 + $0x10] sm:$0xff] }
 0x56e   :  { %v818_v52 = vmul.f32 %v801_v51, %v390_v44  ;;  %v803_v53 = vpop.f32.mrb[23].mxu0  ;;  %v1800_v44 = vmov 0.0|0.0  }
 0x56f   :  { %v819_v54 = vmul.f32 %v803_v53, %v391_v49  ;;  %1612 = vmatprep.subr.bf16.mxu0 %v1800_v44  ;;  %1606 = vmatprep.subr.bf16.mxu1 %v1800_v44  ;;  %v1074_v49 = vld [vmem:[%s2277_s7 + $0x18] sm:$0xff] }
 0x570   :  { %v824_v55 = vpack.c.bf16 %v818_v52, %v816_v45  ;;  %v1613_v45 = vpack.c.bf16 %v1072_v43, %v1071_v42  ;;  %v1616_v51 = vpack.c.bf16 %v1074_v49, %v1073_v47  ;;  %v1076_v52 = vld [vmem:[%s2277_s7 + $0x28] sm:$0xff] }
 0x571   :  { %v825_v56 = vpack.c.bf16 %v819_v54, %v817_v50  ;;  %v1075_v50 = vld [vmem:[%s2277_s7 + $0x20] sm:$0xff]  ;;  %v1803_v54 = vmov 0.0  }
 0x572   :  { %1614 = vmatpush3.bf16.msra.mxu0 %v1613_v45  ;;  %v1607_v53 = vpack.c.bf16 %v1076_v52, %v1075_v50  ;;  %1581 = vmatprep.mubr.msk.f32.mxu0 %vm1802_vm2, %v1803_v54 }
 0x573   :  { %v807_v5 = vpop.f32.mrb[24].mxu0  ;;  %988 = vmatprep.mubr.bf16.mxu1 %v825_v56  ;;  %1615 = vmatprep.subr.bf16.mxu0 %v1800_v44 }
 0x574   :  { %v820_v57 = vmul.f32 %v807_v5, %v392_v3  ;;  %v809_v27 = vpop.f32.mrb[25].mxu0  ;;  %989 = vmatmul.mubr.bf16.vlgmr.msra.gmra.mrb[16].mxu1 %v824_v55  ;;  %v1078_v55 = vld [vmem:[%s2277_s7 + $0x38] sm:$0xff] }
 0x575   :  { %v821_v58 = vmul.f32 %v809_v27, %v393_v26  ;;  %v811_v59 = vpop.f32.mrb[26].mxu0  ;;  %1608 = vmatpush3.bf16.msra.mxu1 %v1607_v53 }
 0x576   :  { %v822_v60 = vmul.f32 %v811_v59, %v394_v6  ;;  %v813_v61 = vpop.f32.mrb[27].mxu0  ;;  %1617 = vmatpush3.bf16.msra.mxu0 %v1616_v51  ;;  %1609 = vmatprep.subr.bf16.mxu1 %v1800_v44 }
 0x577   :  { %v823_v62 = vmul.f32 %v813_v61, %v395_v7  ;;  %1618 = vmatprep.subr.bf16.mxu0 %v1800_v44 }
 0x578   :  { %v826_v8 = vpack.c.bf16 %v822_v60, %v820_v57 }
 0x579   :  { %v827_v63 = vpack.c.bf16 %v823_v62, %v821_v58 }
 0x57b   :  { %996 = vmatprep.mubr.bf16.mxu1 %v827_v63 }
 0x57c   :  { %997 = vmatmul.mubr.bf16.gmra.mrb[20].mxu1 %v826_v8 }
 0x57d   :  { %1570 = vmatprep.mubr.msk.f32.mxu1 %vm1802_vm2, %v1803_v54 }
 0x647   :  { %v1518_v46 = vpop.f32.mrb[16].mxu1 }
 0x648   :  { %v1519_v9 = vpop.f32.mrb[17].mxu1 }
 0x649   :  { %v1520_v0 = vadd.f32 %v1519_v9, %v1518_v46  ;;  %v1521_v1 = vpop.f32.mrb[18].mxu1  ;;  %v1079_v9 = vld [vmem:[%s2277_s7 + $0x40] sm:$0xff] }
 0x64a   :  { %v1522_v10 = vpop.f32.mrb[19].mxu1 }
 0x64b   :  { %v1523_v2 = vadd.f32 %v1522_v10, %v1521_v1  ;;  %v1005_v4 = vsel %vm50_vm0, %v1520_v0, 0.0 }
 0x64c   :  { %1006 = vadd.xlane.f32.xlu0 %v1005_v4 }
 0x64d   :  { %v1008_v48 = vsel %vm50_vm0, %v1523_v2, 0.0 }
 0x64f   :  { %v1524_v12 = vpop.f32.mrb[20].mxu1 }
 0x650   :  { %1009 = vadd.xlane.f32.xlu0 %v1008_v48  ;;  %v1525_v11 = vpop.f32.mrb[21].mxu1 }
 0x651   :  { %v1526_v13 = vadd.f32 %v1525_v11, %v1524_v12  ;;  %v1527_v14 = vpop.f32.mrb[22].mxu1  ;;  %v1081_v11 = vld [vmem:[%s2277_s7 + $0x50] sm:$0xff] }
 0x652   :  { %v1528_v15 = vpop.f32.mrb[23].mxu1 }
 0x653   :  { %v1529_v16 = vadd.f32 %v1528_v15, %v1527_v14  ;;  %v1011_v17 = vsel %vm50_vm0, %v1526_v13, 0.0 }
 0x654   :  { %1012 = vadd.xlane.f32.xlu1 %v1011_v17 }
 0x655   :  { %v1014_v18 = vsel %vm50_vm0, %v1529_v16, 0.0 }
 0x658   :  { %1015 = vadd.xlane.f32.xlu1 %v1014_v18 }
 0x6d9   :  { %v1007_v19 = vpop.xlane.xlu0 %1006 }
 0x6da   :  { %v1017_v20 = vmul.f32 0.03125, %v1007_v19  ;;  %v1083_v19 = vld [vmem:[%s2277_s7 + $0x60] sm:$0xff] }
 0x6dc   :  { %v2167_v21 = vsub.f32 %v1520_v0, %v1017_v20  ;;  %v1080_v0 = vld [vmem:[%s2277_s7 + $0x48] sm:$0xff] }
 0x6dd   :  { %v1010_v22 = vpop.xlane.xlu0 %1009  ;;  %v1619_v4 = vpack.c.bf16 %v1080_v0, %v1079_v9  ;;  %v1084_v20 = vld [vmem:[%s2277_s7 + $0x68] sm:$0xff] }
 0x6de   :  { %v1018_v23 = vmul.f32 0.03125, %v1010_v22  ;;  %v1025_v24 = vmul.f32 %v2167_v21, %v2167_v21 }
 0x6e0   :  { %v2171_v25 = vsub.f32 %v1523_v2, %v1018_v23  ;;  %v1029_v29 = vsel %vm50_vm0, %v1025_v24, 0.0  ;;  %v1625_v23 = vpack.c.bf16 %v1084_v20, %v1083_v19 }
 0x6e1   :  { %1030 = vadd.xlane.f32.xlu0 %v1029_v29  ;;  %v1013_v30 = vpop.xlane.xlu1 %1012  ;;  %v1085_v29 = vld [vmem:[%s2277_s7 + $0x70] sm:$0xff] }
 0x6e2   :  { %v1019_v31 = vmul.f32 0.03125, %v1013_v30  ;;  %v1026_v32 = vmul.f32 %v2171_v25, %v2171_v25  ;;  %v1086_v30 = vld [vmem:[%s2277_s7 + $0x78] sm:$0xff] }
 0x6e4   :  { %v2176_v33 = vsub.f32 %v1526_v13, %v1019_v31  ;;  %v1032_v34 = vsel %vm50_vm0, %v1026_v32, 0.0  ;;  %v1082_v13 = vld [vmem:[%s2277_s7 + $0x58] sm:$0xff]  ;;  %v1628_v31 = vpack.c.bf16 %v1086_v30, %v1085_v29 }
 0x6e5   :  { %1033 = vadd.xlane.f32.xlu0 %v1032_v34  ;;  %v1016_v35 = vpop.xlane.xlu1 %1015 }
 0x6e6   :  { %v1020_v36 = vmul.f32 0.03125, %v1016_v35  ;;  %v1027_v38 = vmul.f32 %v2176_v33, %v2176_v33 }
 0x6e8   :  { %v2181_v39 = vsub.f32 %v1529_v16, %v1020_v36  ;;  %v1035_v40 = vsel %vm50_vm0, %v1027_v38, 0.0  ;;  %v1622_v16 = vpack.c.bf16 %v1082_v13, %v1081_v11 }
 0x6e9   :  { %1036 = vadd.xlane.f32.xlu1 %v1035_v40 }
 0x6ea   :  { %v1028_v37 = vmul.f32 %v2181_v39, %v2181_v39 }
 0x6ec   :  { %v1038_v41 = vsel %vm50_vm0, %v1028_v37, 0.0 }
 0x6ed   :  { %1039 = vadd.xlane.f32.xlu1 %v1038_v41 }
 0x6fb   :  { %1057 = vrot.lane.b32.xlu0 %v1915_v28, %s1795_s15 }
 0x6fe   :  { %1064 = vrot.lane.b32.xlu1 %v1915_v28, %s1801_s5  ;;  %v1077_v28 = vld [vmem:[%s2277_s7 + $0x30] sm:$0xff]  ;;  %s1804_s5 = smov [#allocation5]  }
 0x6ff   :  { %v1610_v56 = vpack.c.bf16 %v1078_v55, %v1077_v28  ;;  %s1388_s11 = sshll.u32 %s1804_s5, 4  ;;  %s1389_s11 = int_to_ptr.vmem [resolvable:$true] %s1388_s11 }
 0x700   :  { %s1768_s7 = scalar_lea.vmem %s1389_s11, 128  ;;  %p1773_p9 = scmp.lt.s32.totalorder %s1389_s11, %s1389_s11 }
 0x701   :  { %1611 = vmatpush3.bf16.msra.mxu1 %v1610_v56  ;;  %p1769_p8 = scmp.ne.s32.totalorder %s1389_s11, %s1768_s7  ;;  %p1774_p10 = scmp.lt.s32.totalorder %s1768_s7, %s1768_s7 }
 0x703   :  { %p1775_p11 = por %p1774_p10, %p1773_p9 }
 0x705   :  { %p1776_p12 = pnand %p1775_p11, %p1769_p8 }
 0x76e   :  { %v1031_v3 = vpop.xlane.xlu0 %1030 }
 0x76f   :  { %v1041_v26 = vmul.f32 0.03125, %v1031_v3 }
 0x771   :  { %v1045_v5 = vadd.f32 1e-05, %v1041_v26 }
 0x772   :  { %v1034_v6 = vpop.xlane.xlu0 %1033 }
 0x773   :  { %1738 = vrsqrt.f32 %v1045_v5  ;;  %v1042_v57 = vmul.f32 0.03125, %v1034_v6 }
 0x775   :  { %v1046_v27 = vadd.f32 1e-05, %v1042_v57 }
 0x776   :  { %v1037_v7 = vpop.xlane.xlu1 %1036  ;;  %v1058_v63 = vpop.permute.xlu0 %1057 }
 0x777   :  { %1740 = vrsqrt.f32 %v1046_v27  ;;  %v1043_v58 = vmul.f32 0.03125, %v1037_v7 }
 0x779   :  { %v1047_v59 = vadd.f32 1e-05, %v1043_v58 }
 0x77a   :  { %v1040_v60 = vpop.xlane.xlu1 %1039 }
 0x77b   :  { %1742 = vrsqrt.f32 %v1047_v59  ;;  %v1044_v61 = vmul.f32 0.03125, %v1040_v60 }
 0x77d   :  { %v1739_v62 = vpop.eup %1738  ;;  %v1048_v8 = vadd.f32 1e-05, %v1044_v61 }
 0x77e   :  { %v1053_v46 = vmul.f32 %v1739_v62, %v2167_v21  ;;  %v1065_v1 = vpop.permute.xlu1 %1064 }
 0x77f   :  { %1744 = vrsqrt.f32 %v1048_v8 }
 0x780   :  { %v1060_v10 = vmul.f32 %v1058_v63, %v1053_v46 }
 0x781   :  { %v1741_v2 = vpop.eup %1740 }
 0x782   :  { %v1054_v12 = vmul.f32 %v1741_v2, %v2171_v25  ;;  %v1067_v48 = vadd.f32 %v1065_v1, %v1060_v10 }
 0x784   :  { %v1061_v14 = vmul.f32 %v1058_v63, %v1054_v12  ;;  %1582 = vmatmul.mubr.msk.f32.vlgmr.msra.gmra.mrb[28].mxu0 %vm50_vm0, %v1067_v48 }
 0x785   :  { %v1743_v15 = vpop.eup %1742  ;;  %1620 = vmatpush3.bf16.msra.mxu0 %v1619_v4  ;;  %1592 = vmatprep.mubr.msk.f32.mxu0 %vm1802_vm2, %v1803_v54 }
 0x786   :  { %v1055_v17 = vmul.f32 %v1743_v15, %v2176_v33  ;;  %v1068_v18 = vadd.f32 %v1065_v1, %v1061_v14  ;;  %1621 = vmatprep.subr.bf16.mxu0 %v1800_v44 }
 0x788   :  { %v1062_v21 = vmul.f32 %v1058_v63, %v1055_v17  ;;  %1571 = vmatmul.mubr.msk.f32.vlgmr.msra.gmra.mrb[24].mxu1 %vm50_vm0, %v1068_v18 }
 0x789   :  { %v1745_v22 = vpop.eup %1744  ;;  %1623 = vmatpush3.bf16.msra.mxu0 %v1622_v16 }
 0x78a   :  { %v1056_v24 = vmul.f32 %v1745_v22, %v2181_v39  ;;  %v1069_v25 = vadd.f32 %v1065_v1, %v1062_v21  ;;  %1624 = vmatprep.subr.bf16.mxu0 %v1800_v44 }
 0x78c   :  { %1593 = vmatmul.mubr.msk.f32.vlgmr.msra.gmra.mrb[28].mxu0 %vm50_vm0, %v1069_v25  ;;  %v1063_v32 = vmul.f32 %v1058_v63, %v1056_v24 }
 0x78d   :  { %1626 = vmatpush3.bf16.msra.mxu0 %v1625_v23  ;;  %1603 = vmatprep.mubr.msk.f32.mxu0 %vm1802_vm2, %v1803_v54 }
 0x78e   :  { %1627 = vmatprep.subr.bf16.mxu0 %v1800_v44  ;;  %v1070_v33 = vadd.f32 %v1065_v1, %v1063_v32 }
 0x791   :  { %1629 = vmatpush3.bf16.msra.mxu0 %v1628_v31 }
 0x794   :  { %1604 = vmatmul.mubr.msk.f32.vlgmr.msra.gmra.mrb[28].mxu0 %vm50_vm0, %v1070_v33 }
 0x85b   :  { %v1156_v34 = vpop.f32.mrb[24].mxu1 }
 0x85c   :  { %v1572_v35 = vpop.f32.mrb[25].mxu1 }
 0x867   :  { %v1376_v36 = vpop.f32.mrb[28].mxu0 }
 0x868   :  { %v1630_v38 = vadd.f32 %v1376_v36, %v1156_v34  ;;  %v1605_v39 = vpop.f32.mrb[29].mxu0 }
 0x86a   :  { %1381 = vst [vmem:[#allocation5] sm:$0xff] %v1630_v38 }
 0x86b   :  { %1779 = shalt.err (!%p1776_p12)
}
 0x86c   :  { %s1780_s13 = scalar_lea.hbm %s2278_s8, 128 }
 0x86d   :  { %p1781_p13 = scmp.ne.s32.totalorder %s2278_s8, %s1780_s13  ;;  %p1784_p0 = scmp.lt.u32.totalorder %s1780_s13, %s2278_s8 }
 0x86f   :  { %p1786_p1 = pnand %p1784_p0, %p1781_p13 }
 0x871   :  { %1789 = shalt.err (!%p1786_p1)
}
 0x872   :  { %1391 = dma.vmem_to_hbm [thread:$0]  %s1389_s11, 128, %s2278_s8, [#allocation4]  }
 0x873   :  { %1792 = dma.done.wait [#allocation4], 128  }
 0x874   :  { %1793 = vsyncadd [#allocation4], 4294967168 }
 0x875   :  { %1395 = vsyncpa [#allocation3], 1 }
 0x876   :  { %1396 = vsyncpa [#allocation4], 1 }

</bundles_post_ra>
